<compile_context>
chip_gen: v5e
topology: v5e:2x2
jax: 0.10.0
libtpu: 0.0.40
codegen_flags: <defaults>
</compile_context>

<pallas_src>
import functools

import jax
import jax.numpy as jnp
from jax.experimental import pallas as pl
from jax.experimental.pallas import tpu as pltpu

EPS = 1e-5
LANE = 128
DEFAULT_TILE_M = 256            # rows per grid step (512-1024 for realistic sizes)
VMEM_LIMIT = 48 * 1024 * 1024   # fits v5e/v6e/v7x scoped VMEM with headroom
_HI = jax.lax.Precision.HIGHEST  # only used by the pure-JAX reference


def _round_up(x, m):
    return (x + m - 1) // m * m


# ---------------------------------------------------------------------------
# Kernels
# ---------------------------------------------------------------------------

def _conv_stats_kernel(p_ref, w_ref, y_ref, sum_ref, sq_ref):
    """One M-tile of conv-as-matmul + per-tile partial BN statistics.

    p: (TM, K) bf16   w: (K, C) bf16 (VMEM-resident, constant index_map)
    y: (TM, C) f32    sum/sq: (1, 1, C) f32 partial sums for this tile.
    Conv bias is omitted: it is cancelled exactly by the batch-mean subtraction
    of the training-mode BatchNorm that follows.
    """
    y = jnp.dot(p_ref[...], w_ref[...], preferred_element_type=jnp.float32)
    y_ref[...] = y
    sum_ref[...] = jnp.sum(y, axis=0, keepdims=True)[None]
    sq_ref[...] = jnp.sum(y * y, axis=0, keepdims=True)[None]


def _bn_relu_kernel(y_ref, sc_ref, sh_ref, o_ref):
    # o = relu(y * scale + shift)
    o_ref[...] = jnp.maximum(
        y_ref[...] * sc_ref[...] + sh_ref[...], 0.0).astype(o_ref.dtype)


def _bn_add_relu_kernel(y_ref, sc_ref, sh_ref, res_ref, o_ref):
    # o = relu(y * scale + shift + identity_shortcut)
    o_ref[...] = jnp.maximum(
        y_ref[...] * sc_ref[...] + sh_ref[...] + res_ref[...], 0.0).astype(o_ref.dtype)


def _bn_proj_add_relu_kernel(y_ref, sc_ref, sh_ref, xs_ref, w3_ref, b3_ref, o_ref):
    # o = relu(y * scale + shift + (xs @ w3 + b3))   (1x1 projection shortcut)
    shortcut = jnp.dot(xs_ref[...], w3_ref[...],
                       preferred_element_type=jnp.float32) + b3_ref[...]
    o_ref[...] = jnp.maximum(
        y_ref[...] * sc_ref[...] + sh_ref[...] + shortcut, 0.0).astype(o_ref.dtype)


# ---------------------------------------------------------------------------
# pallas_call wrappers
# ---------------------------------------------------------------------------

def _compiler_params():
    return pltpu.CompilerParams(
        dimension_semantics=("parallel",),     # M axis is independent per tile
        vmem_limit_bytes=VMEM_LIMIT,
    )


def _conv_stats_call(p, w, tm):
    mpad, k = p.shape
    _, c = w.shape
    nt = mpad // tm
    return pl.pallas_call(
        _conv_stats_kernel,
        grid=(nt,),
        in_specs=[
            pl.BlockSpec((tm, k), lambda i: (i, 0)),
            pl.BlockSpec((k, c), lambda i: (0, 0)),        # weights stay resident
        ],
        out_specs=(
            pl.BlockSpec((tm, c), lambda i: (i, 0)),
            pl.BlockSpec((1, 1, c), lambda i: (i, 0, 0)),  # per-tile partial stats
            pl.BlockSpec((1, 1, c), lambda i: (i, 0, 0)),
        ),
        out_shape=(
            jax.ShapeDtypeStruct((mpad, c), jnp.float32),
            jax.ShapeDtypeStruct((nt, 1, c), jnp.float32),
            jax.ShapeDtypeStruct((nt, 1, c), jnp.float32),
        ),
        compiler_params=_compiler_params(),
    )(p, w)


def _bn_relu_call(y, scale, shift, tm, out_dtype):
    mpad, c = y.shape
    nt = mpad // tm
    return pl.pallas_call(
        _bn_relu_kernel,
        grid=(nt,),
        in_specs=[
            pl.BlockSpec((tm, c), lambda i: (i, 0)),
            pl.BlockSpec((1, c), lambda i: (0, 0)),
            pl.BlockSpec((1, c), lambda i: (0, 0)),
        ],
        out_specs=pl.BlockSpec((tm, c), lambda i: (i, 0)),
        out_shape=jax.ShapeDtypeStruct((mpad, c), out_dtype),
        compiler_params=_compiler_params(),
    )(y, scale, shift)


def _bn_add_relu_call(y, scale, shift, res, tm):
    mpad, c = y.shape
    nt = mpad // tm
    return pl.pallas_call(
        _bn_add_relu_kernel,
        grid=(nt,),
        in_specs=[
            pl.BlockSpec((tm, c), lambda i: (i, 0)),
            pl.BlockSpec((1, c), lambda i: (0, 0)),
            pl.BlockSpec((1, c), lambda i: (0, 0)),
            pl.BlockSpec((tm, c), lambda i: (i, 0)),
        ],
        out_specs=pl.BlockSpec((tm, c), lambda i: (i, 0)),
        out_shape=jax.ShapeDtypeStruct((mpad, c), jnp.float32),
        compiler_params=_compiler_params(),
    )(y, scale, shift, res)


def _bn_proj_add_relu_call(y, scale, shift, xs, w3, b3, tm):
    mpad, c = y.shape
    _, cin = xs.shape
    nt = mpad // tm
    return pl.pallas_call(
        _bn_proj_add_relu_kernel,
        grid=(nt,),
        in_specs=[
            pl.BlockSpec((tm, c), lambda i: (i, 0)),
            pl.BlockSpec((1, c), lambda i: (0, 0)),
            pl.BlockSpec((1, c), lambda i: (0, 0)),
            pl.BlockSpec((tm, cin), lambda i: (i, 0)),
            pl.BlockSpec((cin, c), lambda i: (0, 0)),      # w3 stays resident
            pl.BlockSpec((1, c), lambda i: (0, 0)),
        ],
        out_specs=pl.BlockSpec((tm, c), lambda i: (i, 0)),
        out_shape=jax.ShapeDtypeStruct((mpad, c), jnp.float32),
        compiler_params=_compiler_params(),
    )(y, scale, shift, xs, w3, b3)


# ---------------------------------------------------------------------------
# Glue (layout / im2col / stat reduction) in plain JAX
# ---------------------------------------------------------------------------

def _extract_patches(x_nhwc, k, stride, pad):
    # (N,H,W,C) -> (N,Hout,Wout, k*k*C), last-dim order (dy, dx, cin)
    n, h, w, c = x_nhwc.shape
    xp = jnp.pad(x_nhwc, ((0, 0), (pad, pad), (pad, pad), (0, 0)))
    hout = (h + 2 * pad - k) // stride + 1
    wout = (w + 2 * pad - k) // stride + 1
    slabs = []
    for dy in range(k):
        for dx in range(k):
            slabs.append(xp[:, dy:dy + stride * (hout - 1) + 1:stride,
                            dx:dx + stride * (wout - 1) + 1:stride, :])
    return jnp.concatenate(slabs, axis=-1), hout, wout


def _w_oihw_to_mat(w):
    # (Cout, Cin, KH, KW) -> (KH*KW*Cin, Cout), matching patch ordering (dy, dx, cin)
    cout, cin, kh, kw = w.shape
    return jnp.transpose(w, (2, 3, 1, 0)).reshape(kh * kw * cin, cout)


def _pad2(a, rows, cols, dtype):
    r, c = a.shape
    return jnp.pad(a, ((0, rows - r), (0, cols - c))).astype(dtype)


def _bn_scale_shift(psum, psq, count, gamma, beta, cpad):
    # Reduce the per-tile partial sums (tiny) and fold BN into scale/shift.
    s = jnp.sum(psum, axis=(0, 1))
    ss = jnp.sum(psq, axis=(0, 1))
    mean = s / count
    var = jnp.maximum(ss / count - mean * mean, 0.0)   # biased variance
    g = jnp.pad(gamma, (0, cpad - gamma.shape[0]))
    b = jnp.pad(beta, (0, cpad - beta.shape[0]))
    scale = g * jax.lax.rsqrt(var + EPS)
    shift = b - mean * scale
    return scale[None, :].astype(jnp.float32), shift[None, :].astype(jnp.float32)


def init_residual_params(key, in_channels, out_channels):
    ks = jax.random.split(key, 10)
    s = 0.1
    p = {
        "w1": s * jax.random.normal(ks[0], (out_channels, in_channels, 3, 3), jnp.float32),
        "b1": s * jax.random.normal(ks[1], (out_channels,), jnp.float32),
        "g1": 1.0 + s * jax.random.normal(ks[2], (out_channels,), jnp.float32),
        "be1": s * jax.random.normal(ks[3], (out_channels,), jnp.float32),
        "w2": s * jax.random.normal(ks[4], (out_channels, out_channels, 3, 3), jnp.float32),
        "b2": s * jax.random.normal(ks[5], (out_channels,), jnp.float32),
        "g2": 1.0 + s * jax.random.normal(ks[6], (out_channels,), jnp.float32),
        "be2": s * jax.random.normal(ks[7], (out_channels,), jnp.float32),
    }
    if in_channels != out_channels:
        p["w3"] = s * jax.random.normal(ks[8], (out_channels, in_channels, 1, 1), jnp.float32)
        p["b3"] = s * jax.random.normal(ks[9], (out_channels,), jnp.float32)
    return p


@functools.partial(jax.jit, static_argnames=("stride",))
def residual_forward(params, x_nchw, stride=1):
    """Pallas implementation of Residual.forward. Input/output are NCHW like PyTorch."""
    x = jnp.transpose(x_nchw, (0, 2, 3, 1)).astype(jnp.float32)     # NHWC
    n, h, w, cin = x.shape
    cout = params["w1"].shape[0]
    has_proj = "w3" in params
    if (not has_proj) and stride != 1:
        # Matches the PyTorch module: identity shortcut only adds when shapes agree.
        raise ValueError("identity shortcut requires stride == 1")

    cpad = _round_up(cout, LANE)
    k1pad = _round_up(9 * cin, LANE)
    k2pad = _round_up(9 * cout, LANE)

    # ---- conv1 (3x3, stride, pad=1) + partial BN stats ----
    p1, hout, wout = _extract_patches(x, 3, stride, 1)
    m = n * hout * wout
    tm = min(DEFAULT_TILE_M, _round_up(m, 8))
    mpad = _round_up(m, tm)                       # zero rows contribute 0 to stats

    p1f = _pad2(p1.reshape(m, 9 * cin), mpad, k1pad, jnp.bfloat16)
    w1m = _pad2(_w_oihw_to_mat(params["w1"]), k1pad, cpad, jnp.bfloat16)

    y1, s1, q1 = _conv_stats_call(p1f, w1m, tm)
    sc1, sh1 = _bn_scale_shift(s1, q1, m, params["g1"], params["be1"], cpad)
    out1 = _bn_relu_call(y1, sc1, sh1, tm, jnp.bfloat16)

    # ---- conv2 (3x3, stride=1, pad=1) + partial BN stats ----
    out1_img = out1[:m, :cout].reshape(n, hout, wout, cout)
    p2, _, _ = _extract_patches(out1_img, 3, 1, 1)
    p2f = _pad2(p2.reshape(m, 9 * cout), mpad, k2pad, jnp.bfloat16)
    w2m = _pad2(_w_oihw_to_mat(params["w2"]), k2pad, cpad, jnp.bfloat16)

    y2, s2, q2 = _conv_stats_call(p2f, w2m, tm)
    sc2, sh2 = _bn_scale_shift(s2, q2, m, params["g2"], params["be2"], cpad)

    # ---- BN2 apply + shortcut + final ReLU ----
    xs = x[:, ::stride, ::stride, :].reshape(m, cin)
    if has_proj:
        cinpad = _round_up(cin, LANE)
        xsf = _pad2(xs, mpad, cinpad, jnp.bfloat16)
        w3m = _pad2(_w_oihw_to_mat(params["w3"]), cinpad, cpad, jnp.bfloat16)
        b3 = jnp.pad(params["b3"], (0, cpad - cout))[None, :].astype(jnp.float32)
        out = _bn_proj_add_relu_call(y2, sc2, sh2, xsf, w3m, b3, tm)
    else:
        res = _pad2(xs, mpad, cpad, jnp.float32)
        out = _bn_add_relu_call(y2, sc2, sh2, res, tm)

    out_img = out[:m, :cout].reshape(n, hout, wout, cout)
    return jnp.transpose(out_img, (0, 3, 1, 2))                     # back to NCHW


def reference_forward(params, x_nchw, stride=1):
    # pure-JAX reference reproducing the PyTorch module (training-mode BatchNorm)
    def conv(x, wgt, b, s, pad):
        y = jax.lax.conv_general_dilated(
            x, wgt, window_strides=(s, s), padding=[(pad, pad), (pad, pad)],
            dimension_numbers=("NCHW", "OIHW", "NCHW"), precision=_HI)
        return y + b[None, :, None, None]

    def bn(y, g, be):
        mean = y.mean(axis=(0, 2, 3), keepdims=True)
        var = ((y - mean) ** 2).mean(axis=(0, 2, 3), keepdims=True)
        return (y - mean) / jnp.sqrt(var + EPS) * g[None, :, None, None] + be[None, :, None, None]

    out = jax.nn.relu(bn(conv(x_nchw, params["w1"], params["b1"], stride, 1),
                         params["g1"], params["be1"]))
    out = bn(conv(out, params["w2"], params["b2"], 1, 1), params["g2"], params["be2"])
    if "w3" in params:
        shortcut = conv(x_nchw, params["w3"], params["b3"], stride, 0)
    else:
        shortcut = x_nchw
    return jax.nn.relu(out + shortcut)


if __name__ == "__main__":
    key = jax.random.PRNGKey(0)
    kx, kp1, kp2 = jax.random.split(key, 3)
    x = jax.random.normal(kx, (2, 4, 16, 16), jnp.float32)   # NCHW, like PyTorch

    # Tolerance reflects bf16 MXU inputs (f32 accumulation) vs the f32 HIGHEST reference.
    TOL = 4e-2

    # Case 1: channel change + stride -> 1x1 projection shortcut (conv3 path)
    params_proj = init_residual_params(kp1, in_channels=4, out_channels=8)
    y_proj = jax.block_until_ready(residual_forward(params_proj, x, stride=2))
    ref_proj = reference_forward(params_proj, x, stride=2)
    assert y_proj.shape == (2, 8, 8, 8)
    assert jnp.allclose(y_proj, ref_proj, atol=TOL, rtol=TOL)

    # Case 2: same channels, stride=1 -> identity shortcut (multi-tile grid: M=512)
    params_id = init_residual_params(kp2, in_channels=4, out_channels=4)
    y_id = jax.block_until_ready(residual_forward(params_id, x, stride=1))
    ref_id = reference_forward(params_id, x, stride=1)
    assert y_id.shape == (2, 4, 16, 16)
    assert jnp.allclose(y_id, ref_id, atol=TOL, rtol=TOL)

    print("KERNEL_OK")
</pallas_src>

<mosaic_0001>
module attributes {stable_mosaic.version = 11 : i64} {
  func.func @_conv_stats_kernel(%arg0: i32, %arg1: memref<128x128xbf16, #tpu.memory_space<vmem>>, %arg2: memref<128x128xbf16, #tpu.memory_space<vmem>>, %arg3: memref<128x128xf32, #tpu.memory_space<vmem>>, %arg4: memref<1x1x128xf32, #tpu.memory_space<vmem>>, %arg5: memref<1x1x128xf32, #tpu.memory_space<vmem>>) attributes {dimension_semantics = [#tpu.dimension_semantics<parallel>], iteration_bounds = array<i64: 1>, scalar_prefetch = 0 : i64, scratch_operands = 0 : i64, tpu.core_type = #tpu.core_type<tc>, window_params = [{transform_indices = @transform_0, window_bounds = array<i64: 128, 128>}, {pipeline_mode = #tpu.pipeline_mode<synchronous>, transform_indices = @transform_1, window_bounds = array<i64: 128, 128>}, {transform_indices = @transform_2, window_bounds = array<i64: 128, 128>}, {transform_indices = @transform_3, window_bounds = array<i64: 1, 1, 128>}, {transform_indices = @transform_4, window_bounds = array<i64: 1, 1, 128>}]} {
    %c0 = arith.constant 0 : index
    %c0_0 = arith.constant 0 : index
    %0 = vector.load %arg1[%c0, %c0_0] : memref<128x128xbf16, #tpu.memory_space<vmem>>, vector<128x128xbf16>
    %c0_1 = arith.constant 0 : index
    %c0_2 = arith.constant 0 : index
    %1 = vector.load %arg2[%c0_1, %c0_2] : memref<128x128xbf16, #tpu.memory_space<vmem>>, vector<128x128xbf16>
    %cst = arith.constant dense<0.000000e+00> : vector<128x128xf32>
    %2 = tpu.matmul %0, %1, %cst {dimension_numbers = #tpu.dot_dimension_numbers<[1], [0], [0], [1], [0, 0, 1, 1], [], []>} : vector<128x128xbf16>, vector<128x128xbf16>, vector<128x128xf32> -> vector<128x128xf32>
    %c0_3 = arith.constant 0 : index
    %c0_4 = arith.constant 0 : index
    %3 = vector.load %arg3[%c0_3, %c0_4] : memref<128x128xf32, #tpu.memory_space<vmem>>, vector<128x128xf32>
    tpu.vector_store %arg3[%c0_3, %c0_4], %2 {strides = array<i32>} : memref<128x128xf32, #tpu.memory_space<vmem>>, vector<128x128xf32>,
    %cst_5 = arith.constant dense<0.000000e+00> : vector<128xf32>
    %4 = vector.multi_reduction <add>, %2, %cst_5 [0] : vector<128x128xf32> to vector<128xf32>
    %5 = vector.shape_cast %4 : vector<128xf32> to vector<1x128xf32>
    %6 = vector.shape_cast %5 : vector<1x128xf32> to vector<1x1x128xf32>
    %c0_6 = arith.constant 0 : index
    %c0_7 = arith.constant 0 : index
    %c0_8 = arith.constant 0 : index
    %7 = vector.load %arg4[%c0_6, %c0_7, %c0_8] : memref<1x1x128xf32, #tpu.memory_space<vmem>>, vector<1x1x128xf32>
    tpu.vector_store %arg4[%c0_6, %c0_7, %c0_8], %6 {strides = array<i32>} : memref<1x1x128xf32, #tpu.memory_space<vmem>>, vector<1x1x128xf32>,
    %8 = arith.mulf %2, %2 : vector<128x128xf32>
    %cst_9 = arith.constant dense<0.000000e+00> : vector<128xf32>
    %9 = vector.multi_reduction <add>, %8, %cst_9 [0] : vector<128x128xf32> to vector<128xf32>
    %10 = vector.shape_cast %9 : vector<128xf32> to vector<1x128xf32>
    %11 = vector.shape_cast %10 : vector<1x128xf32> to vector<1x1x128xf32>
    %c0_10 = arith.constant 0 : index
    %c0_11 = arith.constant 0 : index
    %c0_12 = arith.constant 0 : index
    %12 = vector.load %arg5[%c0_10, %c0_11, %c0_12] : memref<1x1x128xf32, #tpu.memory_space<vmem>>, vector<1x1x128xf32>
    tpu.vector_store %arg5[%c0_10, %c0_11, %c0_12], %11 {strides = array<i32>} : memref<1x1x128xf32, #tpu.memory_space<vmem>>, vector<1x1x128xf32>,
    return
  }
  func.func @transform_0(%arg0: i32) -> (i32, i32) {
    %c0_i32 = arith.constant 0 : i32
    %c0_i32_0 = arith.constant 0 : i32
    return %arg0, %c0_i32 : i32, i32
  }
  func.func @transform_1(%arg0: i32) -> (i32, i32) {
    %c0_i32 = arith.constant 0 : i32
    %c0_i32_0 = arith.constant 0 : i32
    %c0_i32_1 = arith.constant 0 : i32
    return %c0_i32, %c0_i32_0 : i32, i32
  }
  func.func @transform_2(%arg0: i32) -> (i32, i32) {
    %c0_i32 = arith.constant 0 : i32
    %c0_i32_0 = arith.constant 0 : i32
    return %arg0, %c0_i32 : i32, i32
  }
  func.func @transform_3(%arg0: i32) -> (i32, i32, i32) {
    %c0_i32 = arith.constant 0 : i32
    %c0_i32_0 = arith.constant 0 : i32
    %c0_i32_1 = arith.constant 0 : i32
    return %arg0, %c0_i32, %c0_i32_0 : i32, i32, i32
  }
  func.func @transform_4(%arg0: i32) -> (i32, i32, i32) {
    %c0_i32 = arith.constant 0 : i32
    %c0_i32_0 = arith.constant 0 : i32
    %c0_i32_1 = arith.constant 0 : i32
    return %arg0, %c0_i32, %c0_i32_0 : i32, i32, i32
  }
}

module attributes {stable_mosaic.version = 11 : i64} {
  func.func @_bn_relu_kernel(%arg0: i32, %arg1: memref<128x128xf32, #tpu.memory_space<vmem>>, %arg2: memref<1x128xf32, #tpu.memory_space<vmem>>, %arg3: memref<1x128xf32, #tpu.memory_space<vmem>>, %arg4: memref<128x128xbf16, #tpu.memory_space<vmem>>) attributes {dimension_semantics = [#tpu.dimension_semantics<parallel>], iteration_bounds = array<i64: 1>, scalar_prefetch = 0 : i64, scratch_operands = 0 : i64, tpu.core_type = #tpu.core_type<tc>, window_params = [{transform_indices = @transform_0, window_bounds = array<i64: 128, 128>}, {pipeline_mode = #tpu.pipeline_mode<synchronous>, transform_indices = @transform_1, window_bounds = array<i64: 1, 128>}, {pipeline_mode = #tpu.pipeline_mode<synchronous>, transform_indices = @transform_2, window_bounds = array<i64: 1, 128>}, {transform_indices = @transform_3, window_bounds = array<i64: 128, 128>}]} {
    %c0 = arith.constant 0 : index
    %c0_0 = arith.constant 0 : index
    %0 = vector.load %arg1[%c0, %c0_0] : memref<128x128xf32, #tpu.memory_space<vmem>>, vector<128x128xf32>
    %c0_1 = arith.constant 0 : index
    %c0_2 = arith.constant 0 : index
    %1 = vector.load %arg2[%c0_1, %c0_2] : memref<1x128xf32, #tpu.memory_space<vmem>>, vector<1x128xf32>
    %2 = vector.broadcast %1 : vector<1x128xf32> to vector<128x128xf32>
    %3 = arith.mulf %0, %2 : vector<128x128xf32>
    %c0_3 = arith.constant 0 : index
    %c0_4 = arith.constant 0 : index
    %4 = vector.load %arg3[%c0_3, %c0_4] : memref<1x128xf32, #tpu.memory_space<vmem>>, vector<1x128xf32>
    %5 = vector.broadcast %4 : vector<1x128xf32> to vector<128x128xf32>
    %6 = arith.addf %3, %5 : vector<128x128xf32>
    %cst = arith.constant 0.000000e+00 : f32
    %7 = vector.broadcast %cst : f32 to vector<128x128xf32>
    %8 = arith.maximumf %6, %7 : vector<128x128xf32>
    %9 = arith.truncf %8 : vector<128x128xf32> to vector<128x128xbf16>
    %c0_5 = arith.constant 0 : index
    %c0_6 = arith.constant 0 : index
    %10 = vector.load %arg4[%c0_5, %c0_6] : memref<128x128xbf16, #tpu.memory_space<vmem>>, vector<128x128xbf16>
    tpu.vector_store %arg4[%c0_5, %c0_6], %9 {strides = array<i32>} : memref<128x128xbf16, #tpu.memory_space<vmem>>, vector<128x128xbf16>,
    return
  }
  func.func @transform_0(%arg0: i32) -> (i32, i32) {
    %c0_i32 = arith.constant 0 : i32
    %c0_i32_0 = arith.constant 0 : i32
    return %arg0, %c0_i32 : i32, i32
  }
  func.func @transform_1(%arg0: i32) -> (i32, i32) {
    %c0_i32 = arith.constant 0 : i32
    %c0_i32_0 = arith.constant 0 : i32
    %c0_i32_1 = arith.constant 0 : i32
    return %c0_i32, %c0_i32_0 : i32, i32
  }
  func.func @transform_2(%arg0: i32) -> (i32, i32) {
    %c0_i32 = arith.constant 0 : i32
    %c0_i32_0 = arith.constant 0 : i32
    %c0_i32_1 = arith.constant 0 : i32
    return %c0_i32, %c0_i32_0 : i32, i32
  }
  func.func @transform_3(%arg0: i32) -> (i32, i32) {
    %c0_i32 = arith.constant 0 : i32
    %c0_i32_0 = arith.constant 0 : i32
    return %arg0, %c0_i32 : i32, i32
  }
}

module attributes {stable_mosaic.version = 11 : i64} {
  func.func @_bn_proj_add_relu_kernel(%arg0: i32, %arg1: memref<128x128xf32, #tpu.memory_space<vmem>>, %arg2: memref<1x128xf32, #tpu.memory_space<vmem>>, %arg3: memref<1x128xf32, #tpu.memory_space<vmem>>, %arg4: memref<128x128xbf16, #tpu.memory_space<vmem>>, %arg5: memref<128x128xbf16, #tpu.memory_space<vmem>>, %arg6: memref<1x128xf32, #tpu.memory_space<vmem>>, %arg7: memref<128x128xf32, #tpu.memory_space<vmem>>) attributes {dimension_semantics = [#tpu.dimension_semantics<parallel>], iteration_bounds = array<i64: 1>, scalar_prefetch = 0 : i64, scratch_operands = 0 : i64, tpu.core_type = #tpu.core_type<tc>, window_params = [{transform_indices = @transform_0, window_bounds = array<i64: 128, 128>}, {pipeline_mode = #tpu.pipeline_mode<synchronous>, transform_indices = @transform_1, window_bounds = array<i64: 1, 128>}, {pipeline_mode = #tpu.pipeline_mode<synchronous>, transform_indices = @transform_2, window_bounds = array<i64: 1, 128>}, {transform_indices = @transform_3, window_bounds = array<i64: 128, 128>}, {pipeline_mode = #tpu.pipeline_mode<synchronous>, transform_indices = @transform_4, window_bounds = array<i64: 128, 128>}, {pipeline_mode = #tpu.pipeline_mode<synchronous>, transform_indices = @transform_5, window_bounds = array<i64: 1, 128>}, {transform_indices = @transform_6, window_bounds = array<i64: 128, 128>}]} {
    %c0 = arith.constant 0 : index
    %c0_0 = arith.constant 0 : index
    %0 = vector.load %arg4[%c0, %c0_0] : memref<128x128xbf16, #tpu.memory_space<vmem>>, vector<128x128xbf16>
    %c0_1 = arith.constant 0 : index
    %c0_2 = arith.constant 0 : index
    %1 = vector.load %arg5[%c0_1, %c0_2] : memref<128x128xbf16, #tpu.memory_space<vmem>>, vector<128x128xbf16>
    %cst = arith.constant dense<0.000000e+00> : vector<128x128xf32>
    %2 = tpu.matmul %0, %1, %cst {dimension_numbers = #tpu.dot_dimension_numbers<[1], [0], [0], [1], [0, 0, 1, 1], [], []>} : vector<128x128xbf16>, vector<128x128xbf16>, vector<128x128xf32> -> vector<128x128xf32>
    %c0_3 = arith.constant 0 : index
    %c0_4 = arith.constant 0 : index
    %3 = vector.load %arg6[%c0_3, %c0_4] : memref<1x128xf32, #tpu.memory_space<vmem>>, vector<1x128xf32>
    %4 = vector.broadcast %3 : vector<1x128xf32> to vector<128x128xf32>
    %5 = arith.addf %2, %4 : vector<128x128xf32>
    %c0_5 = arith.constant 0 : index
    %c0_6 = arith.constant 0 : index
    %6 = vector.load %arg1[%c0_5, %c0_6] : memref<128x128xf32, #tpu.memory_space<vmem>>, vector<128x128xf32>
    %c0_7 = arith.constant 0 : index
    %c0_8 = arith.constant 0 : index
    %7 = vector.load %arg2[%c0_7, %c0_8] : memref<1x128xf32, #tpu.memory_space<vmem>>, vector<1x128xf32>
    %8 = vector.broadcast %7 : vector<1x128xf32> to vector<128x128xf32>
    %9 = arith.mulf %6, %8 : vector<128x128xf32>
    %c0_9 = arith.constant 0 : index
    %c0_10 = arith.constant 0 : index
    %10 = vector.load %arg3[%c0_9, %c0_10] : memref<1x128xf32, #tpu.memory_space<vmem>>, vector<1x128xf32>
    %11 = vector.broadcast %10 : vector<1x128xf32> to vector<128x128xf32>
    %12 = arith.addf %9, %11 : vector<128x128xf32>
    %13 = arith.addf %12, %5 : vector<128x128xf32>
    %cst_11 = arith.constant 0.000000e+00 : f32
    %14 = vector.broadcast %cst_11 : f32 to vector<128x128xf32>
    %15 = arith.maximumf %13, %14 : vector<128x128xf32>
    %c0_12 = arith.constant 0 : index
    %c0_13 = arith.constant 0 : index
    %16 = vector.load %arg7[%c0_12, %c0_13] : memref<128x128xf32, #tpu.memory_space<vmem>>, vector<128x128xf32>
    tpu.vector_store %arg7[%c0_12, %c0_13], %15 {strides = array<i32>} : memref<128x128xf32, #tpu.memory_space<vmem>>, vector<128x128xf32>,
    return
  }
  func.func @transform_0(%arg0: i32) -> (i32, i32) {
    %c0_i32 = arith.constant 0 : i32
    %c0_i32_0 = arith.constant 0 : i32
    return %arg0, %c0_i32 : i32, i32
  }
  func.func @transform_1(%arg0: i32) -> (i32, i32) {
    %c0_i32 = arith.constant 0 : i32
    %c0_i32_0 = arith.constant 0 : i32
    %c0_i32_1 = arith.constant 0 : i32
    return %c0_i32, %c0_i32_0 : i32, i32
  }
  func.func @transform_2(%arg0: i32) -> (i32, i32) {
    %c0_i32 = arith.constant 0 : i32
    %c0_i32_0 = arith.constant 0 : i32
    %c0_i32_1 = arith.constant 0 : i32
    return %c0_i32, %c0_i32_0 : i32, i32
  }
  func.func @transform_3(%arg0: i32) -> (i32, i32) {
    %c0_i32 = arith.constant 0 : i32
    %c0_i32_0 = arith.constant 0 : i32
    return %arg0, %c0_i32 : i32, i32
  }
  func.func @transform_4(%arg0: i32) -> (i32, i32) {
    %c0_i32 = arith.constant 0 : i32
    %c0_i32_0 = arith.constant 0 : i32
    %c0_i32_1 = arith.constant 0 : i32
    return %c0_i32, %c0_i32_0 : i32, i32
  }
  func.func @transform_5(%arg0: i32) -> (i32, i32) {
    %c0_i32 = arith.constant 0 : i32
    %c0_i32_0 = arith.constant 0 : i32
    %c0_i32_1 = arith.constant 0 : i32
    return %c0_i32, %c0_i32_0 : i32, i32
  }
  func.func @transform_6(%arg0: i32) -> (i32, i32) {
    %c0_i32 = arith.constant 0 : i32
    %c0_i32_0 = arith.constant 0 : i32
    return %arg0, %c0_i32 : i32, i32
  }
}

</mosaic_0001>

<bundles_post_ra>
// kernel: residual_forward.5
= control target key start
LH: loop header
LB: loop body
LE: loop exit
PB: predicated region body
PF: predicated region fallthrough
CT: control target
= control target key end

     0   :  { %s287_s0 = inlined_call_operand.vmem [shape: f32[128,128], index: 0, kind: input, shape index: {}]   ;;  %s288_s1 = inlined_call_operand.vmem [shape: f32[1,128], index: 1, kind: input, shape index: {}]   ;;  %s289_s2 = inlined_call_operand.vmem [shape: f32[1,128], index: 2, kind: input, shape index: {}]   ;;  %s290_s3 = inlined_call_operand.vmem [shape: bf16[128,128], index: 3, kind: output, shape index: {}]  }
   0x1   :  { %v14_v0 = vld [vmem:[%s287_s0] sm:$0xff]  ;;  %v15_v1 = vld [vmem:[%s287_s0 + $0x8] sm:$0xff]  ;;  %v16_v4 = vld [vmem:[%s287_s0 + $0x10] sm:$0xff] }
   0x2   :  { %v169_v2 = vld [vmem:[%s288_s1] ss:$0 sm:$0xff]  ;;  %v17_v5 = vld [vmem:[%s287_s0 + $0x18] sm:$0xff]  ;;  %v19_v11 = vld [vmem:[%s287_s0 + $0x28] sm:$0xff] }
   0x3   :  { %v203_v3 = vld [vmem:[%s289_s2] ss:$0 sm:$0xff]  ;;  %v34_v7 = vmul.f32 %v169_v2, %v14_v0  ;;  %v35_v8 = vmul.f32 %v169_v2, %v15_v1  ;;  %v36_v9 = vmul.f32 %v169_v2, %v16_v4  ;;  %v37_v10 = vmul.f32 %v169_v2, %v17_v5  ;;  %v20_v12 = vld [vmem:[%s287_s0 + $0x30] sm:$0xff]  ;;  %v21_v13 = vld [vmem:[%s287_s0 + $0x38] sm:$0xff] }
   0x4   :  { %v18_v6 = vld [vmem:[%s287_s0 + $0x20] sm:$0xff]  ;;  %v39_v15 = vmul.f32 %v169_v2, %v19_v11  ;;  %v40_v16 = vmul.f32 %v169_v2, %v20_v12  ;;  %v41_v17 = vmul.f32 %v169_v2, %v21_v13  ;;  %v23_v27 = vld [vmem:[%s287_s0 + $0x48] sm:$0xff]  ;;  %v24_v32 = vld [vmem:[%s287_s0 + $0x50] sm:$0xff] }
   0x5   :  { %v38_v14 = vmul.f32 %v169_v2, %v18_v6  ;;  %v54_v18 = vadd.f32 %v203_v3, %v34_v7  ;;  %v55_v19 = vadd.f32 %v203_v3, %v35_v8  ;;  %v56_v20 = vadd.f32 %v203_v3, %v36_v9  ;;  %v22_v26 = vld [vmem:[%s287_s0 + $0x40] sm:$0xff]  ;;  %v25_v33 = vld [vmem:[%s287_s0 + $0x58] sm:$0xff]  ;;  %v27_v39 = vld [vmem:[%s287_s0 + $0x68] sm:$0xff] }
   0x6   :  { %v57_v21 = vadd.f32 %v203_v3, %v37_v10  ;;  %v59_v23 = vadd.f32 %v203_v3, %v39_v15  ;;  %v60_v24 = vadd.f32 %v203_v3, %v40_v16  ;;  %v61_v25 = vadd.f32 %v203_v3, %v41_v17  ;;  %v26_v38 = vld [vmem:[%s287_s0 + $0x60] sm:$0xff]  ;;  %v28_v44 = vld [vmem:[%s287_s0 + $0x70] sm:$0xff]  ;;  %v29_v45 = vld [vmem:[%s287_s0 + $0x78] sm:$0xff] }
   0x7   :  { %v58_v22 = vadd.f32 %v203_v3, %v38_v14  ;;  %v70_v28 = vmax.f32 %v54_v18, 0.0  ;;  %v71_v29 = vmax.f32 %v55_v19, 0.0  ;;  %v72_v30 = vmax.f32 %v56_v20, 0.0 }
   0x8   :  { %v73_v31 = vmax.f32 %v57_v21, 0.0  ;;  %v75_v35 = vmax.f32 %v59_v23, 0.0  ;;  %v76_v36 = vmax.f32 %v60_v24, 0.0  ;;  %v77_v37 = vmax.f32 %v61_v25, 0.0 }
   0x9   :  { %v74_v34 = vmax.f32 %v58_v22, 0.0  ;;  %v125_v40 = vpack.c.bf16 %v71_v29, %v70_v28  ;;  %v42_v42 = vmul.f32 %v169_v2, %v22_v26  ;;  %v43_v43 = vmul.f32 %v169_v2, %v23_v27 }
   0xa   :  { %v130_v41 = vpack.c.bf16 %v73_v31, %v72_v30  ;;  %v140_v47 = vpack.c.bf16 %v77_v37, %v76_v36  ;;  %v44_v48 = vmul.f32 %v169_v2, %v24_v32  ;;  %v45_v49 = vmul.f32 %v169_v2, %v25_v33 }
   0xb   :  { %v135_v46 = vpack.c.bf16 %v75_v35, %v74_v34  ;;  %126 = vst [vmem:[%s290_s3] sm:$0xff] %v125_v40   ;;  %v62_v50 = vadd.f32 %v203_v3, %v42_v42  ;;  %v63_v51 = vadd.f32 %v203_v3, %v43_v43  ;;  %v46_v52 = vmul.f32 %v169_v2, %v26_v38 }
   0xc   :  { %v47_v53 = vmul.f32 %v169_v2, %v27_v39  ;;  %162 = vst [vmem:[%s290_s3 + $0x8] sm:$0xff] %v130_v41   ;;  %v64_v54 = vadd.f32 %v203_v3, %v44_v48  ;;  %v65_v55 = vadd.f32 %v203_v3, %v45_v49  ;;  %v48_v56 = vmul.f32 %v169_v2, %v28_v44 }
   0xd   :  { %v49_v57 = vmul.f32 %v169_v2, %v29_v45  ;;  %163 = vst [vmem:[%s290_s3 + $0x10] sm:$0xff] %v135_v46   ;;  %v78_v58 = vmax.f32 %v62_v50, 0.0  ;;  %v79_v59 = vmax.f32 %v63_v51, 0.0  ;;  %v66_v60 = vadd.f32 %v203_v3, %v46_v52 }
   0xe   :  { %v67_v61 = vadd.f32 %v203_v3, %v47_v53  ;;  %164 = vst [vmem:[%s290_s3 + $0x18] sm:$0xff] %v140_v47   ;;  %v80_v62 = vmax.f32 %v64_v54, 0.0  ;;  %v81_v63 = vmax.f32 %v65_v55, 0.0  ;;  %v68_v0 = vadd.f32 %v203_v3, %v48_v56 }
   0xf   :  { %v69_v1 = vadd.f32 %v203_v3, %v49_v57  ;;  %v145_v2 = vpack.c.bf16 %v79_v59, %v78_v58  ;;  %v82_v4 = vmax.f32 %v66_v60, 0.0 }
  0x10   :  { %v83_v5 = vmax.f32 %v67_v61, 0.0  ;;  %v150_v6 = vpack.c.bf16 %v81_v63, %v80_v62  ;;  %v84_v7 = vmax.f32 %v68_v0, 0.0 }
  0x11   :  { %v85_v8 = vmax.f32 %v69_v1, 0.0  ;;  %165 = vst [vmem:[%s290_s3 + $0x20] sm:$0xff] %v145_v2  }
  0x12   :  { %v155_v9 = vpack.c.bf16 %v83_v5, %v82_v4  ;;  %166 = vst [vmem:[%s290_s3 + $0x28] sm:$0xff] %v150_v6  }
  0x13   :  { %v160_v10 = vpack.c.bf16 %v85_v8, %v84_v7 }
  0x14   :  { %167 = vst [vmem:[%s290_s3 + $0x30] sm:$0xff] %v155_v9  }
  0x15   :  { %168 = vst [vmem:[%s290_s3 + $0x38] sm:$0xff] %v160_v10  }

// kernel: residual_forward.4
= control target key start
LH: loop header
LB: loop body
LE: loop exit
PB: predicated region body
PF: predicated region fallthrough
CT: control target
= control target key end

     0   :  { %s510_s1 = inlined_call_operand.vmem [shape: bf16[128,128], index: 1, kind: input, shape index: {}]   ;;  %s511_s0 = inlined_call_operand.vmem [shape: bf16[128,128], index: 0, kind: input, shape index: {}]   ;;  %s512_s2 = inlined_call_operand.vmem [shape: f32[128,128], index: 2, kind: output, shape index: {0}]   ;;  %s513_s3 = inlined_call_operand.vmem [shape: f32[1,1,128], index: 3, kind: output, shape index: {1}]   ;;  %s514_s4 = inlined_call_operand.vmem [shape: f32[1,1,128], index: 4, kind: output, shape index: {2}]  }
   0x1   :  { %v358_v0 = vld [vmem:[%s510_s1 + $0x38] sm:$0xff]  ;;  %v357_v1 = vld [vmem:[%s510_s1 + $0x30] sm:$0xff]  ;;  %v356_v2 = vld [vmem:[%s510_s1 + $0x28] sm:$0xff] }
   0x2   :  { %142 = vmatpush.bf16.msra.mxu0 %v358_v0  ;;  %359 = vmatpush.bf16.msra.mxu1 %v358_v0  ;;  %v355_v3 = vld [vmem:[%s510_s1 + $0x20] sm:$0xff]  ;;  %v354_v4 = vld [vmem:[%s510_s1 + $0x18] sm:$0xff]  ;;  %v353_v5 = vld [vmem:[%s510_s1 + $0x10] sm:$0xff] }
   0x3   :  { %360 = vmatpush.bf16.msra.mxu2 %v358_v0  ;;  %361 = vmatpush.bf16.msra.mxu3 %v358_v0  ;;  %v352_v6 = vld [vmem:[%s510_s1 + $0x8] sm:$0xff]  ;;  %v351_v7 = vld [vmem:[%s510_s1] sm:$0xff]  ;;  %v345_v9 = vld [vmem:[%s511_s0 + $0x10] sm:$0xff] }
   0x4   :  { %v343_v8 = vld [vmem:[%s511_s0] sm:$0xff]  ;;  %v349_v11 = vld [vmem:[%s511_s0 + $0x30] sm:$0xff]  ;;  %v344_v12 = vld [vmem:[%s511_s0 + $0x8] sm:$0xff] }
   0x5   :  { %v347_v10 = vld [vmem:[%s511_s0 + $0x20] sm:$0xff]  ;;  %v346_v13 = vld [vmem:[%s511_s0 + $0x18] sm:$0xff]  ;;  %v348_v14 = vld [vmem:[%s511_s0 + $0x28] sm:$0xff] }
   0x6   :  { %143 = vmatpush.bf16.msra.mxu0 %v357_v1  ;;  %362 = vmatpush.bf16.msra.mxu1 %v357_v1  ;;  %v350_v15 = vld [vmem:[%s511_s0 + $0x38] sm:$0xff] }
   0x7   :  { %363 = vmatpush.bf16.msra.mxu2 %v357_v1  ;;  %364 = vmatpush.bf16.msra.mxu3 %v357_v1 }
   0xa   :  { %144 = vmatpush.bf16.msra.mxu0 %v356_v2  ;;  %365 = vmatpush.bf16.msra.mxu1 %v356_v2 }
   0xb   :  { %366 = vmatpush.bf16.msra.mxu2 %v356_v2  ;;  %367 = vmatpush.bf16.msra.mxu3 %v356_v2 }
   0xe   :  { %145 = vmatpush.bf16.msra.mxu0 %v355_v3  ;;  %368 = vmatpush.bf16.msra.mxu1 %v355_v3 }
   0xf   :  { %369 = vmatpush.bf16.msra.mxu2 %v355_v3  ;;  %370 = vmatpush.bf16.msra.mxu3 %v355_v3 }
  0x12   :  { %146 = vmatpush.bf16.msra.mxu0 %v354_v4  ;;  %371 = vmatpush.bf16.msra.mxu1 %v354_v4 }
  0x13   :  { %372 = vmatpush.bf16.msra.mxu2 %v354_v4  ;;  %373 = vmatpush.bf16.msra.mxu3 %v354_v4 }
  0x16   :  { %147 = vmatpush.bf16.msra.mxu0 %v353_v5  ;;  %374 = vmatpush.bf16.msra.mxu1 %v353_v5 }
  0x17   :  { %375 = vmatpush.bf16.msra.mxu2 %v353_v5  ;;  %376 = vmatpush.bf16.msra.mxu3 %v353_v5 }
  0x1a   :  { %148 = vmatpush.bf16.msra.mxu0 %v352_v6  ;;  %377 = vmatpush.bf16.msra.mxu1 %v352_v6 }
  0x1b   :  { %378 = vmatpush.bf16.msra.mxu2 %v352_v6  ;;  %379 = vmatpush.bf16.msra.mxu3 %v352_v6 }
  0x1e   :  { %149 = vmatpush.bf16.msra.mxu0 %v351_v7  ;;  %380 = vmatpush.bf16.msra.mxu1 %v351_v7 }
  0x1f   :  { %381 = vmatpush.bf16.msra.mxu2 %v351_v7  ;;  %382 = vmatpush.bf16.msra.mxu3 %v351_v7 }
  0x21   :  { %150 = vmatmul.bf16.vlgmr.msra.gmra.mxu0 %v343_v8  ;;  %160 = vmatmul.bf16.vlgmr.msra.gmra.mxu1 %v345_v9 }
  0x22   :  { %170 = vmatmul.bf16.vlgmr.msra.gmra.mxu2 %v347_v10  ;;  %180 = vmatmul.bf16.vlgmr.msra.gmra.mxu3 %v349_v11 }
  0x31   :  { %155 = vmatmul.bf16.gmra.mxu0 %v344_v12  ;;  %165 = vmatmul.bf16.gmra.mxu1 %v346_v13 }
  0x32   :  { %175 = vmatmul.bf16.gmra.mxu2 %v348_v14  ;;  %185 = vmatmul.bf16.gmra.mxu3 %v350_v15 }
  0x9e   :  { %v151_v16 = vpop.f32.mrf.mxu0  ;;  %v161_v17 = vpop.f32.mrf.mxu1 }
  0x9f   :  { %191 = vst [vmem:[%s512_s2] sm:$0xff] %v151_v16  ;;  %v229_v27 = vmul.f32 %v151_v16, %v151_v16  ;;  %v233_v39 = vmul.f32 %v161_v17, %v161_v17 }
  0xa0   :  { %195 = vst [vmem:[%s512_s2 + $0x20] sm:$0xff] %v161_v17 }
  0xa5   :  { %v171_v18 = vpop.f32.mrf.mxu2  ;;  %v181_v19 = vpop.f32.mrf.mxu3 }
  0xa6   :  { %v153_v20 = vpop.f32.mrf.mxu0  ;;  %v163_v21 = vpop.f32.mrf.mxu1  ;;  %199 = vst [vmem:[%s512_s2 + $0x40] sm:$0xff] %v171_v18  ;;  %v237_v53 = vmul.f32 %v171_v18, %v171_v18  ;;  %v241_v1 = vmul.f32 %v181_v19, %v181_v19 }
  0xa7   :  { %192 = vst [vmem:[%s512_s2 + $0x8] sm:$0xff] %v153_v20  ;;  %v230_v26 = vmul.f32 %v153_v20, %v153_v20  ;;  %v207_v28 = vadd.f32 %v153_v20, %v151_v16  ;;  %v234_v42 = vmul.f32 %v163_v21, %v163_v21 }
  0xa8   :  { %196 = vst [vmem:[%s512_s2 + $0x28] sm:$0xff] %v163_v21 }
  0xa9   :  { %203 = vst [vmem:[%s512_s2 + $0x60] sm:$0xff] %v181_v19  ;;  %v245_v30 = vadd.f32 %v230_v26, %v229_v27 }
  0xad   :  { %v173_v22 = vpop.f32.mrf.mxu2  ;;  %v183_v23 = vpop.f32.mrf.mxu3 }
  0xae   :  { %v156_v24 = vpop.f32.mrf.mxu0  ;;  %v166_v25 = vpop.f32.mrf.mxu1  ;;  %200 = vst [vmem:[%s512_s2 + $0x48] sm:$0xff] %v173_v22  ;;  %v238_v56 = vmul.f32 %v173_v22, %v173_v22  ;;  %v242_v4 = vmul.f32 %v183_v23, %v183_v23 }
  0xaf   :  { %193 = vst [vmem:[%s512_s2 + $0x10] sm:$0xff] %v156_v24  ;;  %v231_v29 = vmul.f32 %v156_v24, %v156_v24  ;;  %v208_v31 = vadd.f32 %v207_v28, %v156_v24  ;;  %v235_v45 = vmul.f32 %v166_v25, %v166_v25 }
  0xb0   :  { %197 = vst [vmem:[%s512_s2 + $0x30] sm:$0xff] %v166_v25 }
  0xb1   :  { %204 = vst [vmem:[%s512_s2 + $0x68] sm:$0xff] %v183_v23  ;;  %v246_v36 = vadd.f32 %v245_v30, %v231_v29 }
  0xb5   :  { %v176_v32 = vpop.f32.mrf.mxu2  ;;  %v186_v33 = vpop.f32.mrf.mxu3 }
  0xb6   :  { %v158_v34 = vpop.f32.mrf.mxu0  ;;  %v168_v35 = vpop.f32.mrf.mxu1  ;;  %201 = vst [vmem:[%s512_s2 + $0x50] sm:$0xff] %v176_v32  ;;  %v239_v60 = vmul.f32 %v176_v32, %v176_v32  ;;  %v243_v8 = vmul.f32 %v186_v33, %v186_v33 }
  0xb7   :  { %194 = vst [vmem:[%s512_s2 + $0x18] sm:$0xff] %v158_v34  ;;  %v209_v37 = vadd.f32 %v208_v31, %v158_v34  ;;  %v232_v38 = vmul.f32 %v158_v34, %v158_v34  ;;  %v236_v51 = vmul.f32 %v168_v35, %v168_v35 }
  0xb8   :  { %198 = vst [vmem:[%s512_s2 + $0x38] sm:$0xff] %v168_v35 }
  0xb9   :  { %v210_v40 = vadd.f32 %v209_v37, %v161_v17  ;;  %v247_v41 = vadd.f32 %v246_v36, %v232_v38  ;;  %205 = vst [vmem:[%s512_s2 + $0x70] sm:$0xff] %v186_v33 }
  0xbb   :  { %v248_v43 = vadd.f32 %v247_v41, %v233_v39  ;;  %v211_v44 = vadd.f32 %v210_v40, %v163_v21 }
  0xbd   :  { %v212_v46 = vadd.f32 %v211_v44, %v166_v25  ;;  %v249_v47 = vadd.f32 %v248_v43, %v234_v42  ;;  %v178_v48 = vpop.f32.mrf.mxu2  ;;  %v188_v49 = vpop.f32.mrf.mxu3 }
  0xbe   :  { %202 = vst [vmem:[%s512_s2 + $0x58] sm:$0xff] %v178_v48  ;;  %v240_v0 = vmul.f32 %v178_v48, %v178_v48  ;;  %v244_v12 = vmul.f32 %v188_v49, %v188_v49 }
  0xbf   :  { %v213_v50 = vadd.f32 %v212_v46, %v168_v35  ;;  %v250_v52 = vadd.f32 %v249_v47, %v235_v45  ;;  %206 = vst [vmem:[%s512_s2 + $0x78] sm:$0xff] %v188_v49 }
  0xc1   :  { %v214_v54 = vadd.f32 %v213_v50, %v171_v18  ;;  %v251_v55 = vadd.f32 %v250_v52, %v236_v51 }
  0xc3   :  { %v252_v57 = vadd.f32 %v251_v55, %v237_v53  ;;  %v215_v58 = vadd.f32 %v214_v54, %v173_v22 }
  0xc5   :  { %v216_v59 = vadd.f32 %v215_v58, %v176_v32  ;;  %v253_v61 = vadd.f32 %v252_v57, %v238_v56 }
  0xc7   :  { %v254_v62 = vadd.f32 %v253_v61, %v239_v60  ;;  %v217_v63 = vadd.f32 %v216_v59, %v178_v48 }
  0xc9   :  { %v218_v2 = vadd.f32 %v217_v63, %v181_v19  ;;  %v255_v3 = vadd.f32 %v254_v62, %v240_v0 }
  0xcb   :  { %v256_v5 = vadd.f32 %v255_v3, %v241_v1  ;;  %v219_v6 = vadd.f32 %v218_v2, %v183_v23 }
  0xcd   :  { %v220_v7 = vadd.f32 %v219_v6, %v186_v33  ;;  %v257_v9 = vadd.f32 %v256_v5, %v242_v4 }
  0xcf   :  { %v258_v10 = vadd.f32 %v257_v9, %v243_v8  ;;  %v221_v11 = vadd.f32 %v220_v7, %v188_v49 }
  0xd1   :  { %v222_v13 = vrot.slane %v221_v11, 4  ;;  %v259_v14 = vadd.f32 %v258_v10, %v244_v12 }
  0xd3   :  { %v223_v15 = vadd.f32 %v222_v13, %v221_v11  ;;  %v260_v16 = vrot.slane %v259_v14, 4 }
  0xd5   :  { %v224_v17 = vrot.slane %v223_v15, 2  ;;  %v261_v18 = vadd.f32 %v260_v16, %v259_v14 }
  0xd7   :  { %v225_v20 = vadd.f32 %v224_v17, %v223_v15  ;;  %v262_v21 = vrot.slane %v261_v18, 2 }
  0xd9   :  { %v226_v22 = vrot.slane %v225_v20, 1  ;;  %v263_v19 = vadd.f32 %v262_v21, %v261_v18 }
  0xdb   :  { %v227_v24 = vadd.f32 %v226_v22, %v225_v20  ;;  %v264_v25 = vrot.slane %v263_v19, 1 }
  0xdd   :  { %228 = vst [vmem:[%s513_s3] sm:$0x1] %v227_v24  ;;  %v265_v23 = vadd.f32 %v264_v25, %v263_v19 }
  0xdf   :  { %266 = vst [vmem:[%s514_s4] sm:$0x1] %v265_v23 }

// kernel: residual_forward.7
= control target key start
LH: loop header
LB: loop body
LE: loop exit
PB: predicated region body
PF: predicated region fallthrough
CT: control target
= control target key end

     0   :  { %s661_s4 = inlined_call_operand.vmem [shape: bf16[128,128], index: 4, kind: input, shape index: {}]   ;;  %s662_s1 = inlined_call_operand.vmem [shape: f32[1,128], index: 1, kind: input, shape index: {}]   ;;  %s663_s5 = inlined_call_operand.vmem [shape: f32[1,128], index: 5, kind: input, shape index: {}]   ;;  %s664_s2 = inlined_call_operand.vmem [shape: f32[1,128], index: 2, kind: input, shape index: {}]   ;;  %s665_s3 = inlined_call_operand.vmem [shape: bf16[128,128], index: 3, kind: input, shape index: {}]   ;;  %s666_s0 = inlined_call_operand.vmem [shape: f32[128,128], index: 0, kind: input, shape index: {}]   ;;  %s667_s6 = inlined_call_operand.vmem [shape: f32[128,128], index: 6, kind: output, shape index: {}]  }
   0x1   :  { %v391_v0 = vld [vmem:[%s661_s4 + $0x38] sm:$0xff]  ;;  %v390_v1 = vld [vmem:[%s661_s4 + $0x30] sm:$0xff]  ;;  %v389_v2 = vld [vmem:[%s661_s4 + $0x28] sm:$0xff] }
   0x2   :  { %155 = vmatpush.bf16.msra.mxu0 %v391_v0  ;;  %392 = vmatpush.bf16.msra.mxu1 %v391_v0  ;;  %v388_v3 = vld [vmem:[%s661_s4 + $0x20] sm:$0xff]  ;;  %v387_v4 = vld [vmem:[%s661_s4 + $0x18] sm:$0xff]  ;;  %v386_v5 = vld [vmem:[%s661_s4 + $0x10] sm:$0xff] }
   0x3   :  { %393 = vmatpush.bf16.msra.mxu2 %v391_v0  ;;  %394 = vmatpush.bf16.msra.mxu3 %v391_v0  ;;  %v385_v6 = vld [vmem:[%s661_s4 + $0x8] sm:$0xff]  ;;  %v384_v7 = vld [vmem:[%s661_s4] sm:$0xff]  ;;  %v378_v9 = vld [vmem:[%s665_s3 + $0x10] sm:$0xff] }
   0x4   :  { %v376_v8 = vld [vmem:[%s665_s3] sm:$0xff]  ;;  %v382_v11 = vld [vmem:[%s665_s3 + $0x30] sm:$0xff]  ;;  %v377_v12 = vld [vmem:[%s665_s3 + $0x8] sm:$0xff] }
   0x5   :  { %v380_v10 = vld [vmem:[%s665_s3 + $0x20] sm:$0xff]  ;;  %v379_v13 = vld [vmem:[%s665_s3 + $0x18] sm:$0xff]  ;;  %v381_v14 = vld [vmem:[%s665_s3 + $0x28] sm:$0xff] }
   0x6   :  { %156 = vmatpush.bf16.msra.mxu0 %v390_v1  ;;  %395 = vmatpush.bf16.msra.mxu1 %v390_v1  ;;  %v383_v15 = vld [vmem:[%s665_s3 + $0x38] sm:$0xff]  ;;  %v505_v16 = vld [vmem:[%s662_s1] ss:$0 sm:$0xff]  ;;  %v205_v29 = vld [vmem:[%s666_s0 + $0x8] sm:$0xff] }
   0x7   :  { %396 = vmatpush.bf16.msra.mxu2 %v390_v1  ;;  %397 = vmatpush.bf16.msra.mxu3 %v390_v1  ;;  %v204_v17 = vld [vmem:[%s666_s0] sm:$0xff]  ;;  %v209_v30 = vld [vmem:[%s666_s0 + $0x28] sm:$0xff]  ;;  %v225_v37 = vmul.f32 %v505_v16, %v205_v29  ;;  %v206_v53 = vld [vmem:[%s666_s0 + $0x10] sm:$0xff] }
   0x8   :  { %v208_v18 = vld [vmem:[%s666_s0 + $0x20] sm:$0xff]  ;;  %v224_v19 = vmul.f32 %v505_v16, %v204_v17  ;;  %v229_v38 = vmul.f32 %v505_v16, %v209_v30  ;;  %v213_v47 = vld [vmem:[%s666_s0 + $0x48] sm:$0xff]  ;;  %v210_v54 = vld [vmem:[%s666_s0 + $0x30] sm:$0xff]  ;;  %v226_v63 = vmul.f32 %v505_v16, %v206_v53 }
   0x9   :  { %v517_v20 = vld [vmem:[%s664_s2] ss:$0 sm:$0xff]  ;;  %v228_v21 = vmul.f32 %v505_v16, %v208_v18  ;;  %v217_v48 = vld [vmem:[%s666_s0 + $0x68] sm:$0xff]  ;;  %v233_v59 = vmul.f32 %v505_v16, %v213_v47  ;;  %v230_v0 = vmul.f32 %v505_v16, %v210_v54  ;;  %v207_v18 = vld [vmem:[%s666_s0 + $0x18] sm:$0xff] }
   0xa   :  { %157 = vmatpush.bf16.msra.mxu0 %v389_v2  ;;  %398 = vmatpush.bf16.msra.mxu1 %v389_v2  ;;  %v523_v22 = vld [vmem:[%s663_s5] ss:$0 sm:$0xff]  ;;  %v244_v23 = vadd.f32 %v517_v20, %v224_v19  ;;  %v245_v45 = vadd.f32 %v517_v20, %v225_v37  ;;  %v249_v46 = vadd.f32 %v517_v20, %v229_v38  ;;  %v211_v19 = vld [vmem:[%s666_s0 + $0x38] sm:$0xff] }
   0xb   :  { %399 = vmatpush.bf16.msra.mxu2 %v389_v2  ;;  %400 = vmatpush.bf16.msra.mxu3 %v389_v2  ;;  %v248_v24 = vadd.f32 %v517_v20, %v228_v21  ;;  %v212_v25 = vld [vmem:[%s666_s0 + $0x40] sm:$0xff]  ;;  %v237_v60 = vmul.f32 %v505_v16, %v217_v48  ;;  %v227_v30 = vmul.f32 %v505_v16, %v207_v18 }
   0xc   :  { %v216_v26 = vld [vmem:[%s666_s0 + $0x60] sm:$0xff]  ;;  %v232_v33 = vmul.f32 %v505_v16, %v212_v25 }
   0xd   :  { %v236_v34 = vmul.f32 %v505_v16, %v216_v26 }
   0xe   :  { %158 = vmatpush.bf16.msra.mxu0 %v388_v3  ;;  %401 = vmatpush.bf16.msra.mxu1 %v388_v3  ;;  %v252_v41 = vadd.f32 %v517_v20, %v232_v33 }
   0xf   :  { %402 = vmatpush.bf16.msra.mxu2 %v388_v3  ;;  %403 = vmatpush.bf16.msra.mxu3 %v388_v3  ;;  %v256_v42 = vadd.f32 %v517_v20, %v236_v34 }
  0x12   :  { %159 = vmatpush.bf16.msra.mxu0 %v387_v4  ;;  %404 = vmatpush.bf16.msra.mxu1 %v387_v4 }
  0x13   :  { %405 = vmatpush.bf16.msra.mxu2 %v387_v4  ;;  %406 = vmatpush.bf16.msra.mxu3 %v387_v4 }
  0x16   :  { %160 = vmatpush.bf16.msra.mxu0 %v386_v5  ;;  %407 = vmatpush.bf16.msra.mxu1 %v386_v5 }
  0x17   :  { %408 = vmatpush.bf16.msra.mxu2 %v386_v5  ;;  %409 = vmatpush.bf16.msra.mxu3 %v386_v5  ;;  %v253_v5 = vadd.f32 %v517_v20, %v233_v59 }
  0x1a   :  { %161 = vmatpush.bf16.msra.mxu0 %v385_v6  ;;  %410 = vmatpush.bf16.msra.mxu1 %v385_v6 }
  0x1b   :  { %411 = vmatpush.bf16.msra.mxu2 %v385_v6  ;;  %412 = vmatpush.bf16.msra.mxu3 %v385_v6  ;;  %v257_v6 = vadd.f32 %v517_v20, %v237_v60 }
  0x1e   :  { %162 = vmatpush.bf16.msra.mxu0 %v384_v7  ;;  %413 = vmatpush.bf16.msra.mxu1 %v384_v7 }
  0x1f   :  { %414 = vmatpush.bf16.msra.mxu2 %v384_v7  ;;  %415 = vmatpush.bf16.msra.mxu3 %v384_v7 }
  0x21   :  { %163 = vmatmul.bf16.vlgmr.msra.gmra.mxu0 %v376_v8  ;;  %173 = vmatmul.bf16.vlgmr.msra.gmra.mxu1 %v378_v9  ;;  %v246_v9 = vadd.f32 %v517_v20, %v226_v63 }
  0x22   :  { %183 = vmatmul.bf16.vlgmr.msra.gmra.mxu2 %v380_v10  ;;  %193 = vmatmul.bf16.vlgmr.msra.gmra.mxu3 %v382_v11  ;;  %v250_v10 = vadd.f32 %v517_v20, %v230_v0  ;;  %v214_v11 = vld [vmem:[%s666_s0 + $0x50] sm:$0xff] }
  0x23   :  { %v234_v26 = vmul.f32 %v505_v16, %v214_v11 }
  0x31   :  { %168 = vmatmul.bf16.gmra.mxu0 %v377_v12  ;;  %178 = vmatmul.bf16.gmra.mxu1 %v379_v13  ;;  %v218_v12 = vld [vmem:[%s666_s0 + $0x70] sm:$0xff] }
  0x32   :  { %188 = vmatmul.bf16.gmra.mxu2 %v381_v14  ;;  %198 = vmatmul.bf16.gmra.mxu3 %v383_v15 }
  0x9e   :  { %v164_v27 = vpop.f32.mrf.mxu0  ;;  %v174_v28 = vpop.f32.mrf.mxu1 }
  0x9f   :  { %v165_v31 = vadd.f32 %v523_v22, %v164_v27  ;;  %v175_v32 = vadd.f32 %v523_v22, %v174_v28  ;;  %v238_v27 = vmul.f32 %v505_v16, %v218_v12 }
  0xa1   :  { %v260_v35 = vadd.f32 %v244_v23, %v165_v31  ;;  %v264_v36 = vadd.f32 %v248_v24, %v175_v32  ;;  %v231_v31 = vmul.f32 %v505_v16, %v211_v19  ;;  %v258_v37 = vadd.f32 %v517_v20, %v238_v27 }
  0xa3   :  { %v276_v39 = vmax.f32 %v260_v35, 0.0  ;;  %v280_v40 = vmax.f32 %v264_v36, 0.0  ;;  %v254_v36 = vadd.f32 %v517_v20, %v234_v26 }
  0xa5   :  { %292 = vst [vmem:[%s667_s6] sm:$0xff] %v276_v39  ;;  %v184_v43 = vpop.f32.mrf.mxu2  ;;  %v194_v44 = vpop.f32.mrf.mxu3 }
  0xa6   :  { %296 = vst [vmem:[%s667_s6 + $0x20] sm:$0xff] %v280_v40  ;;  %v185_v49 = vadd.f32 %v523_v22, %v184_v43  ;;  %v195_v50 = vadd.f32 %v523_v22, %v194_v44  ;;  %v166_v51 = vpop.f32.mrf.mxu0  ;;  %v176_v52 = vpop.f32.mrf.mxu1  ;;  %v247_v40 = vadd.f32 %v517_v20, %v227_v30  ;;  %v219_v43 = vld [vmem:[%s666_s0 + $0x78] sm:$0xff] }
  0xa7   :  { %v167_v55 = vadd.f32 %v523_v22, %v166_v51  ;;  %v177_v56 = vadd.f32 %v523_v22, %v176_v52  ;;  %v239_v53 = vmul.f32 %v505_v16, %v219_v43 }
  0xa8   :  { %v268_v57 = vadd.f32 %v252_v41, %v185_v49  ;;  %v272_v58 = vadd.f32 %v256_v42, %v195_v50  ;;  %v251_v41 = vadd.f32 %v517_v20, %v231_v31  ;;  %v215_v42 = vld [vmem:[%s666_s0 + $0x58] sm:$0xff] }
  0xa9   :  { %v261_v61 = vadd.f32 %v245_v45, %v167_v55  ;;  %v265_v62 = vadd.f32 %v249_v46, %v177_v56  ;;  %v235_v52 = vmul.f32 %v505_v16, %v215_v42 }
  0xaa   :  { %v284_v1 = vmax.f32 %v268_v57, 0.0  ;;  %v288_v2 = vmax.f32 %v272_v58, 0.0 }
  0xab   :  { %v277_v3 = vmax.f32 %v261_v61, 0.0  ;;  %v281_v4 = vmax.f32 %v265_v62, 0.0  ;;  %v255_v60 = vadd.f32 %v517_v20, %v235_v52  ;;  %v259_v61 = vadd.f32 %v517_v20, %v239_v53 }
  0xac   :  { %300 = vst [vmem:[%s667_s6 + $0x40] sm:$0xff] %v284_v1 }
  0xad   :  { %304 = vst [vmem:[%s667_s6 + $0x60] sm:$0xff] %v288_v2  ;;  %v186_v7 = vpop.f32.mrf.mxu2  ;;  %v196_v8 = vpop.f32.mrf.mxu3 }
  0xae   :  { %293 = vst [vmem:[%s667_s6 + $0x8] sm:$0xff] %v277_v3  ;;  %v187_v13 = vadd.f32 %v523_v22, %v186_v7  ;;  %v197_v14 = vadd.f32 %v523_v22, %v196_v8  ;;  %v169_v15 = vpop.f32.mrf.mxu0  ;;  %v179_v17 = vpop.f32.mrf.mxu1 }
  0xaf   :  { %297 = vst [vmem:[%s667_s6 + $0x28] sm:$0xff] %v281_v4  ;;  %v170_v21 = vadd.f32 %v523_v22, %v169_v15  ;;  %v180_v23 = vadd.f32 %v523_v22, %v179_v17 }
  0xb0   :  { %v269_v24 = vadd.f32 %v253_v5, %v187_v13  ;;  %v273_v25 = vadd.f32 %v257_v6, %v197_v14 }
  0xb1   :  { %v262_v28 = vadd.f32 %v246_v9, %v170_v21  ;;  %v266_v29 = vadd.f32 %v250_v10, %v180_v23 }
  0xb2   :  { %v285_v32 = vmax.f32 %v269_v24, 0.0  ;;  %v289_v33 = vmax.f32 %v273_v25, 0.0 }
  0xb3   :  { %v278_v34 = vmax.f32 %v262_v28, 0.0  ;;  %v282_v35 = vmax.f32 %v266_v29, 0.0 }
  0xb4   :  { %301 = vst [vmem:[%s667_s6 + $0x48] sm:$0xff] %v285_v32 }
  0xb5   :  { %305 = vst [vmem:[%s667_s6 + $0x68] sm:$0xff] %v289_v33  ;;  %v189_v38 = vpop.f32.mrf.mxu2  ;;  %v199_v39 = vpop.f32.mrf.mxu3 }
  0xb6   :  { %294 = vst [vmem:[%s667_s6 + $0x10] sm:$0xff] %v278_v34  ;;  %v190_v44 = vadd.f32 %v523_v22, %v189_v38  ;;  %v200_v45 = vadd.f32 %v523_v22, %v199_v39  ;;  %v171_v46 = vpop.f32.mrf.mxu0  ;;  %v181_v47 = vpop.f32.mrf.mxu1 }
  0xb7   :  { %298 = vst [vmem:[%s667_s6 + $0x30] sm:$0xff] %v282_v35  ;;  %v172_v48 = vadd.f32 %v523_v22, %v171_v46  ;;  %v182_v49 = vadd.f32 %v523_v22, %v181_v47 }
  0xb8   :  { %v270_v50 = vadd.f32 %v254_v36, %v190_v44  ;;  %v274_v51 = vadd.f32 %v258_v37, %v200_v45 }
  0xb9   :  { %v263_v54 = vadd.f32 %v247_v40, %v172_v48  ;;  %v267_v55 = vadd.f32 %v251_v41, %v182_v49 }
  0xba   :  { %v286_v56 = vmax.f32 %v270_v50, 0.0  ;;  %v290_v57 = vmax.f32 %v274_v51, 0.0 }
  0xbb   :  { %v279_v58 = vmax.f32 %v263_v54, 0.0  ;;  %v283_v59 = vmax.f32 %v267_v55, 0.0 }
  0xbc   :  { %302 = vst [vmem:[%s667_s6 + $0x50] sm:$0xff] %v286_v56 }
  0xbd   :  { %306 = vst [vmem:[%s667_s6 + $0x70] sm:$0xff] %v290_v57  ;;  %v191_v62 = vpop.f32.mrf.mxu2  ;;  %v201_v16 = vpop.f32.mrf.mxu3 }
  0xbe   :  { %295 = vst [vmem:[%s667_s6 + $0x18] sm:$0xff] %v279_v58  ;;  %v192_v63 = vadd.f32 %v523_v22, %v191_v62  ;;  %v202_v0 = vadd.f32 %v523_v22, %v201_v16 }
  0xbf   :  { %299 = vst [vmem:[%s667_s6 + $0x38] sm:$0xff] %v283_v59 }
  0xc0   :  { %v271_v1 = vadd.f32 %v255_v60, %v192_v63  ;;  %v275_v20 = vadd.f32 %v259_v61, %v202_v0 }
  0xc2   :  { %v287_v2 = vmax.f32 %v271_v1, 0.0  ;;  %v291_v3 = vmax.f32 %v275_v20, 0.0 }
  0xc4   :  { %303 = vst [vmem:[%s667_s6 + $0x58] sm:$0xff] %v287_v2 }
  0xc5   :  { %307 = vst [vmem:[%s667_s6 + $0x78] sm:$0xff] %v291_v3 }

</bundles_post_ra>
